<compile_context>
chip_gen: v5e
topology: v5e:2x2
jax: 0.10.0
libtpu: 0.0.40
codegen_flags: <defaults>
</compile_context>

<pallas_src>
import jax
import jax.numpy as jnp
from jax import lax
from jax.experimental import pallas as pl
from jax.experimental.pallas import tpu as pltpu


def bilstm_encoder_kernel(x_ref, h0_ref, w_ref, u_ref, out_ref, gx_ref):
    N4 = h0_ref.shape[1]          # 4N : elementwise working width (128 at N=32)
    N2 = N4 // 2                  # 2N : concatenated bi-directional hidden width
    N8 = u_ref.shape[1]           # 8N : all four gates, both directions
    Tp1, B, _ = out_ref.shape
    T = Tp1 - 1

    # --- Hoisted input projection: one MXU matmul covers every timestep, every
    #     sequence, both directions and all four gates. Bias is folded into the
    #     last row of w_ref (x carries a trailing ones column).
    gx_ref[...] = jnp.dot(x_ref[...], w_ref[...],
                          preferred_element_type=jnp.float32)

    # Loop-invariant values hoisted off the serial chain.
    u = u_ref[...]                                        # (2N, 8N)
    lane = lax.broadcasted_iota(jnp.int32, (B, N4), 1)
    is_lo = lane < N2                                     # lanes [0:2N)

    # h / c carried as (B, 4N): low 2N lanes are the real [dir1 | dir2] state,
    # high lanes are don't-care filler so every elementwise op below is a
    # whole-vreg op (no sub-128-lane realignment on the critical path).
    h = jnp.broadcast_to(h0_ref[...], (B, N4))            # lanes [0:2N) = [h0|h0]
    c = jnp.zeros((B, N4), jnp.float32)
    out_ref[0] = h                                        # row 0 = [h0 | h0 | pad]

    # --- Serial recurrence, fully unrolled (T is a static Python int).
    #     One MXU push, whole-vreg EUP passes, one pltpu.roll per step.
    for t in range(T):
        gates = gx_ref[t * B:(t + 1) * B, :] + jnp.dot(
            h[:, 0:N2], u, preferred_element_type=jnp.float32)     # (B, 8N)
        # gate column order: [f1 f2 | i1 i2 | o1 o2 | c1 c2]
        fi = jax.nn.sigmoid(gates[:, 0:N4])               # vreg 0: [f | i]
        og_pre = gates[:, N4:N8]                          # vreg 1: [o | g]
        og = jnp.where(is_lo, jax.nn.sigmoid(og_pre), jnp.tanh(og_pre))
        cg = jnp.where(is_lo, c, og)                      # [c | g]
        prod = fi * cg                                    # [f*c | i*g]
        c = prod + pltpu.roll(prod, shift=N2, axis=1)     # c_new in both halves
        h = og * jnp.tanh(c)                              # lanes [0:2N) = h_new
        # Direct store into the output block (no hbuf scratch). Lanes [2N:4N)
        # hold don't-care values; the wrapper slices them off.
        out_ref[t + 1] = h


def _block_diag(a, b):
    """[[a, 0], [0, b]] for same-shaped 2-D blocks."""
    za = jnp.zeros_like(a)
    zb = jnp.zeros_like(b)
    return jnp.concatenate([jnp.concatenate([a, zb], axis=1),
                            jnp.concatenate([za, b], axis=1)], axis=0)


def _fuse_params(p1, p2):
    """Fused block-diagonal slabs, gate order [f1 f2 | i1 i2 | o1 o2 | c1 c2]."""
    (Wf1, Wi1, Wo1, Wc1, Uf1, Ui1, Uo1, Uc1, bf1, bi1, bo1, bc1) = p1
    (Wf2, Wi2, Wo2, Wc2, Uf2, Ui2, Uo2, Uc2, bf2, bi2, bo2, bc2) = p2
    # NOTE: the PyTorch weights dict maps 'Wo' -> W_f, so the o-gate input
    # projection uses W_f (per direction). This bug is reproduced on purpose.
    w_blk = jnp.concatenate([_block_diag(Wf1, Wf2), _block_diag(Wi1, Wi2),
                             _block_diag(Wf1, Wf2), _block_diag(Wc1, Wc2)],
                            axis=1)                                   # (2M, 8N)
    u_blk = jnp.concatenate([_block_diag(Uf1.T, Uf2.T), _block_diag(Ui1.T, Ui2.T),
                             _block_diag(Uo1.T, Uo2.T), _block_diag(Uc1.T, Uc2.T)],
                            axis=1)                                   # (2N, 8N)
    b_blk = jnp.concatenate([bf1.T, bf2.T, bi1.T, bi2.T,
                             bo1.T, bo2.T, bc1.T, bc2.T], axis=1)     # (1, 8N)
    return w_blk, u_blk, b_blk


def encoder_rnn_forward(x, hidden, params_l2r, params_r2l):
    """x: (B, T, 1, M) or (T, 1, M) float; hidden: (1, N) float.
    Returns (B, T+1, 2N) (or (T+1, 2N) for unbatched input)."""
    squeeze = (x.ndim == 3)
    if squeeze:
        x = x[None]
    B, T, _, M = x.shape
    N = hidden.shape[1]
    N2 = 2 * N

    xf = x.reshape(B, T, M).astype(jnp.float32)
    # Row (t, b) holds both directions' inputs: [x_t | x_{T-1-t}].
    x_pair = jnp.concatenate([xf, xf[:, ::-1, :]], axis=-1)          # (B, T, 2M)
    x_pair = jnp.transpose(x_pair, (1, 0, 2)).reshape(T * B, 2 * M)  # (T*B, 2M)
    # Trailing ones column folds the bias into the fused weight slab.
    x_aug = jnp.concatenate(
        [x_pair, jnp.ones((T * B, 1), jnp.float32)], axis=1)         # (T*B, 2M+1)

    w_blk, u_blk, b_blk = _fuse_params(params_l2r, params_r2l)
    w_aug = jnp.concatenate([w_blk, b_blk], axis=0)                  # (2M+1, 8N)

    h0 = hidden.astype(jnp.float32).reshape(1, N)
    # (1, 4N) row: [h0 | h0 | 0-pad]; low 2N lanes double as the initial carry.
    h0_row = jnp.concatenate(
        [h0, h0, jnp.zeros((1, N2), jnp.float32)], axis=1)           # (1, 4N)

    vmem = pl.BlockSpec(memory_space=pltpu.MemorySpace.VMEM)
    out = pl.pallas_call(
        bilstm_encoder_kernel,
        out_shape=jax.ShapeDtypeStruct((T + 1, B, 2 * N2), jnp.float32),
        in_specs=[vmem] * 4,
        out_specs=vmem,
        scratch_shapes=[
            pltpu.VMEM((T * B, 8 * N), jnp.float32),   # hoisted x@W gate slab
        ],
    )(x_aug, h0_row, w_aug, u_blk)

    out = jnp.transpose(out[:, :, :N2], (1, 0, 2))                   # (B, T+1, 2N)
    return out[0] if squeeze else out


def encoder_reference(x_seq, h0, p_l2r, p_r2l):
    """Pure-JAX replica of the PyTorch forward (column-vector math), one sequence."""
    T, M = x_seq.shape
    N = h0.shape[1]

    def run(p, idx_order):
        Wf, Wi, Wo, Wc, Uf, Ui, Uo, Uc, bf, bi, bo, bc = p
        h = h0.reshape(N, 1)
        c = jnp.zeros((N, 1), jnp.float32)
        hs = []
        for t in idx_order:
            x = x_seq[t].reshape(M, 1)
            f = jax.nn.sigmoid(Wf.T @ x + Uf @ h + bf)
            i = jax.nn.sigmoid(Wi.T @ x + Ui @ h + bi)
            o = jax.nn.sigmoid(Wf.T @ x + Uo @ h + bo)   # 'Wo' -> W_f bug
            c = f * c + i * jnp.tanh(Wc.T @ x + Uc @ h + bc)
            h = o * jnp.tanh(c)
            hs.append(h.reshape(-1))
        return hs

    hs_f = run(p_l2r, range(T))
    hs_b = run(p_r2l, range(T - 1, -1, -1))
    rows = [jnp.concatenate([h0.reshape(-1), h0.reshape(-1)])]
    for t in range(T):
        rows.append(jnp.concatenate([hs_f[t], hs_b[t]]))
    return jnp.stack(rows)


if __name__ == "__main__":
    B, T, M, N = 8, 8, 16, 32  # batch of sequences, seq_len, input_size, hidden_size

    key = jax.random.PRNGKey(0)
    keys = jax.random.split(key, 25)

    def make_params(ks):
        shapes = [(M, N)] * 4 + [(N, N)] * 4 + [(N, 1)] * 4
        return tuple(jax.random.uniform(k, s, dtype=jnp.float32)
                     for k, s in zip(ks, shapes))

    params_l2r = make_params(keys[0:12])
    params_r2l = make_params(keys[12:24])

    # B independent input sequences of embeddings (B, T, 1, M); initial hidden as
    # a row (1, N) (zeros, matching get_initial_hidden_state up to orientation).
    x = jax.random.uniform(keys[24], (B, T, 1, M), dtype=jnp.float32)
    h0 = jnp.zeros((1, N), dtype=jnp.float32)

    out = encoder_rnn_forward(x, h0, params_l2r, params_r2l)
    out = jax.block_until_ready(out)
    assert out.shape == (B, T + 1, 2 * N), out.shape

    ref = jax.vmap(
        lambda xs: encoder_reference(xs, h0, params_l2r, params_r2l)
    )(x.reshape(B, T, M))
    assert jnp.allclose(out, ref, rtol=1e-3, atol=1e-3), \
        float(jnp.max(jnp.abs(out - ref)))
    print("KERNEL_OK")
</pallas_src>

<mosaic_0001>
module attributes {stable_mosaic.version = 11 : i64} {
  func.func @bilstm_encoder_kernel(%arg0: memref<64x33xf32, #tpu.memory_space<vmem>>, %arg1: memref<1x128xf32, #tpu.memory_space<vmem>>, %arg2: memref<33x256xf32, #tpu.memory_space<vmem>>, %arg3: memref<64x256xf32, #tpu.memory_space<vmem>>, %arg4: memref<9x8x128xf32, #tpu.memory_space<vmem>>, %arg5: memref<64x256xf32, #tpu.memory_space<vmem>>) attributes {dimension_semantics = [], scalar_prefetch = 0 : i64, scratch_operands = 1 : i64, tpu.core_type = #tpu.core_type<tc>} {
    %c0 = arith.constant 0 : index
    %c0_0 = arith.constant 0 : index
    %0 = vector.load %arg0[%c0, %c0_0] : memref<64x33xf32, #tpu.memory_space<vmem>>, vector<64x33xf32>
    %c0_1 = arith.constant 0 : index
    %c0_2 = arith.constant 0 : index
    %1 = vector.load %arg2[%c0_1, %c0_2] : memref<33x256xf32, #tpu.memory_space<vmem>>, vector<33x256xf32>
    %cst = arith.constant dense<0.000000e+00> : vector<64x256xf32>
    %2 = tpu.matmul %0, %1, %cst {dimension_numbers = #tpu.dot_dimension_numbers<[1], [0], [0], [1], [0, 0, 1, 1], [], []>} : vector<64x33xf32>, vector<33x256xf32>, vector<64x256xf32> -> vector<64x256xf32>
    %c0_3 = arith.constant 0 : index
    %c0_4 = arith.constant 0 : index
    %3 = vector.load %arg5[%c0_3, %c0_4] : memref<64x256xf32, #tpu.memory_space<vmem>>, vector<64x256xf32>
    tpu.vector_store %arg5[%c0_3, %c0_4], %2 {strides = array<i32>} : memref<64x256xf32, #tpu.memory_space<vmem>>, vector<64x256xf32>,
    %c0_5 = arith.constant 0 : index
    %c0_6 = arith.constant 0 : index
    %4 = vector.load %arg3[%c0_5, %c0_6] : memref<64x256xf32, #tpu.memory_space<vmem>>, vector<64x256xf32>
    %5 = tpu.iota {dimensions = array<i32: 1>} : vector<8x128xi32>
    %c64_i32 = arith.constant 64 : i32
    %6 = vector.broadcast %c64_i32 : i32 to vector<8x128xi32>
    %7 = arith.cmpi slt, %5, %6 : vector<8x128xi32>
    %c0_7 = arith.constant 0 : index
    %c0_8 = arith.constant 0 : index
    %8 = vector.load %arg1[%c0_7, %c0_8] : memref<1x128xf32, #tpu.memory_space<vmem>>, vector<1x128xf32>
    %9 = vector.shape_cast %8 : vector<1x128xf32> to vector<1x128xf32>
    %10 = vector.broadcast %9 : vector<1x128xf32> to vector<8x128xf32>
    %cst_9 = arith.constant 0.000000e+00 : f32
    %11 = vector.broadcast %cst_9 : f32 to vector<8x128xf32>
    %c0_10 = arith.constant 0 : index
    %c0_11 = arith.constant 0 : index
    %c0_12 = arith.constant 0 : index
    %12 = vector.load %arg4[%c0_10, %c0_11, %c0_12] : memref<9x8x128xf32, #tpu.memory_space<vmem>>, vector<1x8x128xf32>
    %13 = vector.shape_cast %12 : vector<1x8x128xf32> to vector<8x128xf32>
    %14 = vector.shape_cast %10 : vector<8x128xf32> to vector<1x8x128xf32>
    tpu.vector_store %arg4[%c0_10, %c0_11, %c0_12], %14 {strides = array<i32>} : memref<9x8x128xf32, #tpu.memory_space<vmem>>, vector<1x8x128xf32>,
    %c0_13 = arith.constant 0 : index
    %c0_14 = arith.constant 0 : index
    %15 = vector.load %arg5[%c0_13, %c0_14] : memref<64x256xf32, #tpu.memory_space<vmem>>, vector<8x256xf32>
    %16 = vector.extract_strided_slice %10 {offsets = [0, 0], sizes = [8, 64], strides = [1, 1]} : vector<8x128xf32> to vector<8x64xf32>
    %cst_15 = arith.constant dense<0.000000e+00> : vector<8x256xf32>
    %17 = tpu.matmul %16, %4, %cst_15 {dimension_numbers = #tpu.dot_dimension_numbers<[1], [0], [0], [1], [0, 0, 1, 1], [], []>} : vector<8x64xf32>, vector<64x256xf32>, vector<8x256xf32> -> vector<8x256xf32>
    %18 = arith.addf %15, %17 : vector<8x256xf32>
    %19 = vector.extract_strided_slice %18 {offsets = [0, 0], sizes = [8, 128], strides = [1, 1]} : vector<8x256xf32> to vector<8x128xf32>
    %20 = arith.negf %19 : vector<8x128xf32>
    %21 = math.exp %20 : vector<8x128xf32>
    %cst_16 = arith.constant 1.000000e+00 : f32
    %22 = vector.broadcast %cst_16 : f32 to vector<8x128xf32>
    %23 = arith.addf %22, %21 : vector<8x128xf32>
    %24 = arith.divf %22, %23 : vector<8x128xf32>
    %25 = vector.extract_strided_slice %18 {offsets = [0, 128], sizes = [8, 128], strides = [1, 1]} : vector<8x256xf32> to vector<8x128xf32>
    %26 = arith.negf %25 : vector<8x128xf32>
    %27 = math.exp %26 : vector<8x128xf32>
    %cst_17 = arith.constant 1.000000e+00 : f32
    %28 = vector.broadcast %cst_17 : f32 to vector<8x128xf32>
    %29 = arith.addf %28, %27 : vector<8x128xf32>
    %30 = arith.divf %28, %29 : vector<8x128xf32>
    %31 = math.tanh %25 : vector<8x128xf32>
    %32 = arith.select %7, %30, %31 : vector<8x128xi1>, vector<8x128xf32>
    %33 = arith.select %7, %11, %32 : vector<8x128xi1>, vector<8x128xf32>
    %34 = arith.mulf %24, %33 : vector<8x128xf32>
    %c64_i32_18 = arith.constant 64 : i32
    %35 = tpu.dynamic_rotate %34 by %c64_i32_18 dim 1 : vector<8x128xf32>, i32 -> vector<8x128xf32>
    %36 = arith.addf %34, %35 : vector<8x128xf32>
    %37 = math.tanh %36 : vector<8x128xf32>
    %38 = arith.mulf %32, %37 : vector<8x128xf32>
    %c1 = arith.constant 1 : index
    %c0_19 = arith.constant 0 : index
    %c0_20 = arith.constant 0 : index
    %39 = vector.load %arg4[%c1, %c0_19, %c0_20] : memref<9x8x128xf32, #tpu.memory_space<vmem>>, vector<1x8x128xf32>
    %40 = vector.shape_cast %39 : vector<1x8x128xf32> to vector<8x128xf32>
    %41 = vector.shape_cast %38 : vector<8x128xf32> to vector<1x8x128xf32>
    tpu.vector_store %arg4[%c1, %c0_19, %c0_20], %41 {strides = array<i32>} : memref<9x8x128xf32, #tpu.memory_space<vmem>>, vector<1x8x128xf32>,
    %c8 = arith.constant 8 : index
    %c0_21 = arith.constant 0 : index
    %42 = vector.load %arg5[%c8, %c0_21] : memref<64x256xf32, #tpu.memory_space<vmem>>, vector<8x256xf32>
    %43 = vector.extract_strided_slice %38 {offsets = [0, 0], sizes = [8, 64], strides = [1, 1]} : vector<8x128xf32> to vector<8x64xf32>
    %cst_22 = arith.constant dense<0.000000e+00> : vector<8x256xf32>
    %44 = tpu.matmul %43, %4, %cst_22 {dimension_numbers = #tpu.dot_dimension_numbers<[1], [0], [0], [1], [0, 0, 1, 1], [], []>} : vector<8x64xf32>, vector<64x256xf32>, vector<8x256xf32> -> vector<8x256xf32>
    %45 = arith.addf %42, %44 : vector<8x256xf32>
    %46 = vector.extract_strided_slice %45 {offsets = [0, 0], sizes = [8, 128], strides = [1, 1]} : vector<8x256xf32> to vector<8x128xf32>
    %47 = arith.negf %46 : vector<8x128xf32>
    %48 = math.exp %47 : vector<8x128xf32>
    %cst_23 = arith.constant 1.000000e+00 : f32
    %49 = vector.broadcast %cst_23 : f32 to vector<8x128xf32>
    %50 = arith.addf %49, %48 : vector<8x128xf32>
    %51 = arith.divf %49, %50 : vector<8x128xf32>
    %52 = vector.extract_strided_slice %45 {offsets = [0, 128], sizes = [8, 128], strides = [1, 1]} : vector<8x256xf32> to vector<8x128xf32>
    %53 = arith.negf %52 : vector<8x128xf32>
    %54 = math.exp %53 : vector<8x128xf32>
    %cst_24 = arith.constant 1.000000e+00 : f32
    %55 = vector.broadcast %cst_24 : f32 to vector<8x128xf32>
    %56 = arith.addf %55, %54 : vector<8x128xf32>
    %57 = arith.divf %55, %56 : vector<8x128xf32>
    %58 = math.tanh %52 : vector<8x128xf32>
    %59 = arith.select %7, %57, %58 : vector<8x128xi1>, vector<8x128xf32>
    %60 = arith.select %7, %36, %59 : vector<8x128xi1>, vector<8x128xf32>
    %61 = arith.mulf %51, %60 : vector<8x128xf32>
    %c64_i32_25 = arith.constant 64 : i32
    %62 = tpu.dynamic_rotate %61 by %c64_i32_25 dim 1 : vector<8x128xf32>, i32 -> vector<8x128xf32>
    %63 = arith.addf %61, %62 : vector<8x128xf32>
    %64 = math.tanh %63 : vector<8x128xf32>
    %65 = arith.mulf %59, %64 : vector<8x128xf32>
    %c2 = arith.constant 2 : index
    %c0_26 = arith.constant 0 : index
    %c0_27 = arith.constant 0 : index
    %66 = vector.load %arg4[%c2, %c0_26, %c0_27] : memref<9x8x128xf32, #tpu.memory_space<vmem>>, vector<1x8x128xf32>
    %67 = vector.shape_cast %66 : vector<1x8x128xf32> to vector<8x128xf32>
    %68 = vector.shape_cast %65 : vector<8x128xf32> to vector<1x8x128xf32>
    tpu.vector_store %arg4[%c2, %c0_26, %c0_27], %68 {strides = array<i32>} : memref<9x8x128xf32, #tpu.memory_space<vmem>>, vector<1x8x128xf32>,
    %c16 = arith.constant 16 : index
    %c0_28 = arith.constant 0 : index
    %69 = vector.load %arg5[%c16, %c0_28] : memref<64x256xf32, #tpu.memory_space<vmem>>, vector<8x256xf32>
    %70 = vector.extract_strided_slice %65 {offsets = [0, 0], sizes = [8, 64], strides = [1, 1]} : vector<8x128xf32> to vector<8x64xf32>
    %cst_29 = arith.constant dense<0.000000e+00> : vector<8x256xf32>
    %71 = tpu.matmul %70, %4, %cst_29 {dimension_numbers = #tpu.dot_dimension_numbers<[1], [0], [0], [1], [0, 0, 1, 1], [], []>} : vector<8x64xf32>, vector<64x256xf32>, vector<8x256xf32> -> vector<8x256xf32>
    %72 = arith.addf %69, %71 : vector<8x256xf32>
    %73 = vector.extract_strided_slice %72 {offsets = [0, 0], sizes = [8, 128], strides = [1, 1]} : vector<8x256xf32> to vector<8x128xf32>
    %74 = arith.negf %73 : vector<8x128xf32>
    %75 = math.exp %74 : vector<8x128xf32>
    %cst_30 = arith.constant 1.000000e+00 : f32
    %76 = vector.broadcast %cst_30 : f32 to vector<8x128xf32>
    %77 = arith.addf %76, %75 : vector<8x128xf32>
    %78 = arith.divf %76, %77 : vector<8x128xf32>
    %79 = vector.extract_strided_slice %72 {offsets = [0, 128], sizes = [8, 128], strides = [1, 1]} : vector<8x256xf32> to vector<8x128xf32>
    %80 = arith.negf %79 : vector<8x128xf32>
    %81 = math.exp %80 : vector<8x128xf32>
    %cst_31 = arith.constant 1.000000e+00 : f32
    %82 = vector.broadcast %cst_31 : f32 to vector<8x128xf32>
    %83 = arith.addf %82, %81 : vector<8x128xf32>
    %84 = arith.divf %82, %83 : vector<8x128xf32>
    %85 = math.tanh %79 : vector<8x128xf32>
    %86 = arith.select %7, %84, %85 : vector<8x128xi1>, vector<8x128xf32>
    %87 = arith.select %7, %63, %86 : vector<8x128xi1>, vector<8x128xf32>
    %88 = arith.mulf %78, %87 : vector<8x128xf32>
    %c64_i32_32 = arith.constant 64 : i32
    %89 = tpu.dynamic_rotate %88 by %c64_i32_32 dim 1 : vector<8x128xf32>, i32 -> vector<8x128xf32>
    %90 = arith.addf %88, %89 : vector<8x128xf32>
    %91 = math.tanh %90 : vector<8x128xf32>
    %92 = arith.mulf %86, %91 : vector<8x128xf32>
    %c3 = arith.constant 3 : index
    %c0_33 = arith.constant 0 : index
    %c0_34 = arith.constant 0 : index
    %93 = vector.load %arg4[%c3, %c0_33, %c0_34] : memref<9x8x128xf32, #tpu.memory_space<vmem>>, vector<1x8x128xf32>
    %94 = vector.shape_cast %93 : vector<1x8x128xf32> to vector<8x128xf32>
    %95 = vector.shape_cast %92 : vector<8x128xf32> to vector<1x8x128xf32>
    tpu.vector_store %arg4[%c3, %c0_33, %c0_34], %95 {strides = array<i32>} : memref<9x8x128xf32, #tpu.memory_space<vmem>>, vector<1x8x128xf32>,
    %c24 = arith.constant 24 : index
    %c0_35 = arith.constant 0 : index
    %96 = vector.load %arg5[%c24, %c0_35] : memref<64x256xf32, #tpu.memory_space<vmem>>, vector<8x256xf32>
    %97 = vector.extract_strided_slice %92 {offsets = [0, 0], sizes = [8, 64], strides = [1, 1]} : vector<8x128xf32> to vector<8x64xf32>
    %cst_36 = arith.constant dense<0.000000e+00> : vector<8x256xf32>
    %98 = tpu.matmul %97, %4, %cst_36 {dimension_numbers = #tpu.dot_dimension_numbers<[1], [0], [0], [1], [0, 0, 1, 1], [], []>} : vector<8x64xf32>, vector<64x256xf32>, vector<8x256xf32> -> vector<8x256xf32>
    %99 = arith.addf %96, %98 : vector<8x256xf32>
    %100 = vector.extract_strided_slice %99 {offsets = [0, 0], sizes = [8, 128], strides = [1, 1]} : vector<8x256xf32> to vector<8x128xf32>
    %101 = arith.negf %100 : vector<8x128xf32>
    %102 = math.exp %101 : vector<8x128xf32>
    %cst_37 = arith.constant 1.000000e+00 : f32
    %103 = vector.broadcast %cst_37 : f32 to vector<8x128xf32>
    %104 = arith.addf %103, %102 : vector<8x128xf32>
    %105 = arith.divf %103, %104 : vector<8x128xf32>
    %106 = vector.extract_strided_slice %99 {offsets = [0, 128], sizes = [8, 128], strides = [1, 1]} : vector<8x256xf32> to vector<8x128xf32>
    %107 = arith.negf %106 : vector<8x128xf32>
    %108 = math.exp %107 : vector<8x128xf32>
    %cst_38 = arith.constant 1.000000e+00 : f32
    %109 = vector.broadcast %cst_38 : f32 to vector<8x128xf32>
    %110 = arith.addf %109, %108 : vector<8x128xf32>
    %111 = arith.divf %109, %110 : vector<8x128xf32>
    %112 = math.tanh %106 : vector<8x128xf32>
    %113 = arith.select %7, %111, %112 : vector<8x128xi1>, vector<8x128xf32>
    %114 = arith.select %7, %90, %113 : vector<8x128xi1>, vector<8x128xf32>
    %115 = arith.mulf %105, %114 : vector<8x128xf32>
    %c64_i32_39 = arith.constant 64 : i32
    %116 = tpu.dynamic_rotate %115 by %c64_i32_39 dim 1 : vector<8x128xf32>, i32 -> vector<8x128xf32>
    %117 = arith.addf %115, %116 : vector<8x128xf32>
    %118 = math.tanh %117 : vector<8x128xf32>
    %119 = arith.mulf %113, %118 : vector<8x128xf32>
    %c4 = arith.constant 4 : index
    %c0_40 = arith.constant 0 : index
    %c0_41 = arith.constant 0 : index
    %120 = vector.load %arg4[%c4, %c0_40, %c0_41] : memref<9x8x128xf32, #tpu.memory_space<vmem>>, vector<1x8x128xf32>
    %121 = vector.shape_cast %120 : vector<1x8x128xf32> to vector<8x128xf32>
    %122 = vector.shape_cast %119 : vector<8x128xf32> to vector<1x8x128xf32>
    tpu.vector_store %arg4[%c4, %c0_40, %c0_41], %122 {strides = array<i32>} : memref<9x8x128xf32, #tpu.memory_space<vmem>>, vector<1x8x128xf32>,
    %c32 = arith.constant 32 : index
    %c0_42 = arith.constant 0 : index
    %123 = vector.load %arg5[%c32, %c0_42] : memref<64x256xf32, #tpu.memory_space<vmem>>, vector<8x256xf32>
    %124 = vector.extract_strided_slice %119 {offsets = [0, 0], sizes = [8, 64], strides = [1, 1]} : vector<8x128xf32> to vector<8x64xf32>
    %cst_43 = arith.constant dense<0.000000e+00> : vector<8x256xf32>
    %125 = tpu.matmul %124, %4, %cst_43 {dimension_numbers = #tpu.dot_dimension_numbers<[1], [0], [0], [1], [0, 0, 1, 1], [], []>} : vector<8x64xf32>, vector<64x256xf32>, vector<8x256xf32> -> vector<8x256xf32>
    %126 = arith.addf %123, %125 : vector<8x256xf32>
    %127 = vector.extract_strided_slice %126 {offsets = [0, 0], sizes = [8, 128], strides = [1, 1]} : vector<8x256xf32> to vector<8x128xf32>
    %128 = arith.negf %127 : vector<8x128xf32>
    %129 = math.exp %128 : vector<8x128xf32>
    %cst_44 = arith.constant 1.000000e+00 : f32
    %130 = vector.broadcast %cst_44 : f32 to vector<8x128xf32>
    %131 = arith.addf %130, %129 : vector<8x128xf32>
    %132 = arith.divf %130, %131 : vector<8x128xf32>
    %133 = vector.extract_strided_slice %126 {offsets = [0, 128], sizes = [8, 128], strides = [1, 1]} : vector<8x256xf32> to vector<8x128xf32>
    %134 = arith.negf %133 : vector<8x128xf32>
    %135 = math.exp %134 : vector<8x128xf32>
    %cst_45 = arith.constant 1.000000e+00 : f32
    %136 = vector.broadcast %cst_45 : f32 to vector<8x128xf32>
    %137 = arith.addf %136, %135 : vector<8x128xf32>
    %138 = arith.divf %136, %137 : vector<8x128xf32>
    %139 = math.tanh %133 : vector<8x128xf32>
    %140 = arith.select %7, %138, %139 : vector<8x128xi1>, vector<8x128xf32>
    %141 = arith.select %7, %117, %140 : vector<8x128xi1>, vector<8x128xf32>
    %142 = arith.mulf %132, %141 : vector<8x128xf32>
    %c64_i32_46 = arith.constant 64 : i32
    %143 = tpu.dynamic_rotate %142 by %c64_i32_46 dim 1 : vector<8x128xf32>, i32 -> vector<8x128xf32>
    %144 = arith.addf %142, %143 : vector<8x128xf32>
    %145 = math.tanh %144 : vector<8x128xf32>
    %146 = arith.mulf %140, %145 : vector<8x128xf32>
    %c5 = arith.constant 5 : index
    %c0_47 = arith.constant 0 : index
    %c0_48 = arith.constant 0 : index
    %147 = vector.load %arg4[%c5, %c0_47, %c0_48] : memref<9x8x128xf32, #tpu.memory_space<vmem>>, vector<1x8x128xf32>
    %148 = vector.shape_cast %147 : vector<1x8x128xf32> to vector<8x128xf32>
    %149 = vector.shape_cast %146 : vector<8x128xf32> to vector<1x8x128xf32>
    tpu.vector_store %arg4[%c5, %c0_47, %c0_48], %149 {strides = array<i32>} : memref<9x8x128xf32, #tpu.memory_space<vmem>>, vector<1x8x128xf32>,
    %c40 = arith.constant 40 : index
    %c0_49 = arith.constant 0 : index
    %150 = vector.load %arg5[%c40, %c0_49] : memref<64x256xf32, #tpu.memory_space<vmem>>, vector<8x256xf32>
    %151 = vector.extract_strided_slice %146 {offsets = [0, 0], sizes = [8, 64], strides = [1, 1]} : vector<8x128xf32> to vector<8x64xf32>
    %cst_50 = arith.constant dense<0.000000e+00> : vector<8x256xf32>
    %152 = tpu.matmul %151, %4, %cst_50 {dimension_numbers = #tpu.dot_dimension_numbers<[1], [0], [0], [1], [0, 0, 1, 1], [], []>} : vector<8x64xf32>, vector<64x256xf32>, vector<8x256xf32> -> vector<8x256xf32>
    %153 = arith.addf %150, %152 : vector<8x256xf32>
    %154 = vector.extract_strided_slice %153 {offsets = [0, 0], sizes = [8, 128], strides = [1, 1]} : vector<8x256xf32> to vector<8x128xf32>
    %155 = arith.negf %154 : vector<8x128xf32>
    %156 = math.exp %155 : vector<8x128xf32>
    %cst_51 = arith.constant 1.000000e+00 : f32
    %157 = vector.broadcast %cst_51 : f32 to vector<8x128xf32>
    %158 = arith.addf %157, %156 : vector<8x128xf32>
    %159 = arith.divf %157, %158 : vector<8x128xf32>
    %160 = vector.extract_strided_slice %153 {offsets = [0, 128], sizes = [8, 128], strides = [1, 1]} : vector<8x256xf32> to vector<8x128xf32>
    %161 = arith.negf %160 : vector<8x128xf32>
    %162 = math.exp %161 : vector<8x128xf32>
    %cst_52 = arith.constant 1.000000e+00 : f32
    %163 = vector.broadcast %cst_52 : f32 to vector<8x128xf32>
    %164 = arith.addf %163, %162 : vector<8x128xf32>
    %165 = arith.divf %163, %164 : vector<8x128xf32>
    %166 = math.tanh %160 : vector<8x128xf32>
    %167 = arith.select %7, %165, %166 : vector<8x128xi1>, vector<8x128xf32>
    %168 = arith.select %7, %144, %167 : vector<8x128xi1>, vector<8x128xf32>
    %169 = arith.mulf %159, %168 : vector<8x128xf32>
    %c64_i32_53 = arith.constant 64 : i32
    %170 = tpu.dynamic_rotate %169 by %c64_i32_53 dim 1 : vector<8x128xf32>, i32 -> vector<8x128xf32>
    %171 = arith.addf %169, %170 : vector<8x128xf32>
    %172 = math.tanh %171 : vector<8x128xf32>
    %173 = arith.mulf %167, %172 : vector<8x128xf32>
    %c6 = arith.constant 6 : index
    %c0_54 = arith.constant 0 : index
    %c0_55 = arith.constant 0 : index
    %174 = vector.load %arg4[%c6, %c0_54, %c0_55] : memref<9x8x128xf32, #tpu.memory_space<vmem>>, vector<1x8x128xf32>
    %175 = vector.shape_cast %174 : vector<1x8x128xf32> to vector<8x128xf32>
    %176 = vector.shape_cast %173 : vector<8x128xf32> to vector<1x8x128xf32>
    tpu.vector_store %arg4[%c6, %c0_54, %c0_55], %176 {strides = array<i32>} : memref<9x8x128xf32, #tpu.memory_space<vmem>>, vector<1x8x128xf32>,
    %c48 = arith.constant 48 : index
    %c0_56 = arith.constant 0 : index
    %177 = vector.load %arg5[%c48, %c0_56] : memref<64x256xf32, #tpu.memory_space<vmem>>, vector<8x256xf32>
    %178 = vector.extract_strided_slice %173 {offsets = [0, 0], sizes = [8, 64], strides = [1, 1]} : vector<8x128xf32> to vector<8x64xf32>
    %cst_57 = arith.constant dense<0.000000e+00> : vector<8x256xf32>
    %179 = tpu.matmul %178, %4, %cst_57 {dimension_numbers = #tpu.dot_dimension_numbers<[1], [0], [0], [1], [0, 0, 1, 1], [], []>} : vector<8x64xf32>, vector<64x256xf32>, vector<8x256xf32> -> vector<8x256xf32>
    %180 = arith.addf %177, %179 : vector<8x256xf32>
    %181 = vector.extract_strided_slice %180 {offsets = [0, 0], sizes = [8, 128], strides = [1, 1]} : vector<8x256xf32> to vector<8x128xf32>
    %182 = arith.negf %181 : vector<8x128xf32>
    %183 = math.exp %182 : vector<8x128xf32>
    %cst_58 = arith.constant 1.000000e+00 : f32
    %184 = vector.broadcast %cst_58 : f32 to vector<8x128xf32>
    %185 = arith.addf %184, %183 : vector<8x128xf32>
    %186 = arith.divf %184, %185 : vector<8x128xf32>
    %187 = vector.extract_strided_slice %180 {offsets = [0, 128], sizes = [8, 128], strides = [1, 1]} : vector<8x256xf32> to vector<8x128xf32>
    %188 = arith.negf %187 : vector<8x128xf32>
    %189 = math.exp %188 : vector<8x128xf32>
    %cst_59 = arith.constant 1.000000e+00 : f32
    %190 = vector.broadcast %cst_59 : f32 to vector<8x128xf32>
    %191 = arith.addf %190, %189 : vector<8x128xf32>
    %192 = arith.divf %190, %191 : vector<8x128xf32>
    %193 = math.tanh %187 : vector<8x128xf32>
    %194 = arith.select %7, %192, %193 : vector<8x128xi1>, vector<8x128xf32>
    %195 = arith.select %7, %171, %194 : vector<8x128xi1>, vector<8x128xf32>
    %196 = arith.mulf %186, %195 : vector<8x128xf32>
    %c64_i32_60 = arith.constant 64 : i32
    %197 = tpu.dynamic_rotate %196 by %c64_i32_60 dim 1 : vector<8x128xf32>, i32 -> vector<8x128xf32>
    %198 = arith.addf %196, %197 : vector<8x128xf32>
    %199 = math.tanh %198 : vector<8x128xf32>
    %200 = arith.mulf %194, %199 : vector<8x128xf32>
    %c7 = arith.constant 7 : index
    %c0_61 = arith.constant 0 : index
    %c0_62 = arith.constant 0 : index
    %201 = vector.load %arg4[%c7, %c0_61, %c0_62] : memref<9x8x128xf32, #tpu.memory_space<vmem>>, vector<1x8x128xf32>
    %202 = vector.shape_cast %201 : vector<1x8x128xf32> to vector<8x128xf32>
    %203 = vector.shape_cast %200 : vector<8x128xf32> to vector<1x8x128xf32>
    tpu.vector_store %arg4[%c7, %c0_61, %c0_62], %203 {strides = array<i32>} : memref<9x8x128xf32, #tpu.memory_space<vmem>>, vector<1x8x128xf32>,
    %c56 = arith.constant 56 : index
    %c0_63 = arith.constant 0 : index
    %204 = vector.load %arg5[%c56, %c0_63] : memref<64x256xf32, #tpu.memory_space<vmem>>, vector<8x256xf32>
    %205 = vector.extract_strided_slice %200 {offsets = [0, 0], sizes = [8, 64], strides = [1, 1]} : vector<8x128xf32> to vector<8x64xf32>
    %cst_64 = arith.constant dense<0.000000e+00> : vector<8x256xf32>
    %206 = tpu.matmul %205, %4, %cst_64 {dimension_numbers = #tpu.dot_dimension_numbers<[1], [0], [0], [1], [0, 0, 1, 1], [], []>} : vector<8x64xf32>, vector<64x256xf32>, vector<8x256xf32> -> vector<8x256xf32>
    %207 = arith.addf %204, %206 : vector<8x256xf32>
    %208 = vector.extract_strided_slice %207 {offsets = [0, 0], sizes = [8, 128], strides = [1, 1]} : vector<8x256xf32> to vector<8x128xf32>
    %209 = arith.negf %208 : vector<8x128xf32>
    %210 = math.exp %209 : vector<8x128xf32>
    %cst_65 = arith.constant 1.000000e+00 : f32
    %211 = vector.broadcast %cst_65 : f32 to vector<8x128xf32>
    %212 = arith.addf %211, %210 : vector<8x128xf32>
    %213 = arith.divf %211, %212 : vector<8x128xf32>
    %214 = vector.extract_strided_slice %207 {offsets = [0, 128], sizes = [8, 128], strides = [1, 1]} : vector<8x256xf32> to vector<8x128xf32>
    %215 = arith.negf %214 : vector<8x128xf32>
    %216 = math.exp %215 : vector<8x128xf32>
    %cst_66 = arith.constant 1.000000e+00 : f32
    %217 = vector.broadcast %cst_66 : f32 to vector<8x128xf32>
    %218 = arith.addf %217, %216 : vector<8x128xf32>
    %219 = arith.divf %217, %218 : vector<8x128xf32>
    %220 = math.tanh %214 : vector<8x128xf32>
    %221 = arith.select %7, %219, %220 : vector<8x128xi1>, vector<8x128xf32>
    %222 = arith.select %7, %198, %221 : vector<8x128xi1>, vector<8x128xf32>
    %223 = arith.mulf %213, %222 : vector<8x128xf32>
    %c64_i32_67 = arith.constant 64 : i32
    %224 = tpu.dynamic_rotate %223 by %c64_i32_67 dim 1 : vector<8x128xf32>, i32 -> vector<8x128xf32>
    %225 = arith.addf %223, %224 : vector<8x128xf32>
    %226 = math.tanh %225 : vector<8x128xf32>
    %227 = arith.mulf %221, %226 : vector<8x128xf32>
    %c8_68 = arith.constant 8 : index
    %c0_69 = arith.constant 0 : index
    %c0_70 = arith.constant 0 : index
    %228 = vector.load %arg4[%c8_68, %c0_69, %c0_70] : memref<9x8x128xf32, #tpu.memory_space<vmem>>, vector<1x8x128xf32>
    %229 = vector.shape_cast %228 : vector<1x8x128xf32> to vector<8x128xf32>
    %230 = vector.shape_cast %227 : vector<8x128xf32> to vector<1x8x128xf32>
    tpu.vector_store %arg4[%c8_68, %c0_69, %c0_70], %230 {strides = array<i32>} : memref<9x8x128xf32, #tpu.memory_space<vmem>>, vector<1x8x128xf32>,
    return
  }
}

</mosaic_0001>

<bundles_post_ra>
// kernel: tpu_custom_call.1
= control target key start
LH: loop header
LB: loop body
LE: loop exit
PB: predicated region body
PF: predicated region fallthrough
CT: control target
= control target key end

     0   :  { %9 = vsyncpa [#allocation4], 0  ;;  %s1559_s0 = inlined_call_operand.vmem [shape: f32[64,33], index: 0, kind: input, shape index: {}]   ;;  %s1560_s1 = inlined_call_operand.vmem [shape: f32[1,128], index: 1, kind: input, shape index: {}]   ;;  %s1561_s2 = inlined_call_operand.vmem [shape: f32[33,256], index: 2, kind: input, shape index: {}]   ;;  %s1562_s3 = inlined_call_operand.hbm [shape: f32[64,256], index: 3, kind: input, shape index: {}]   ;;  %s1563_s4 = inlined_call_operand.hbm [shape: f32[9,8,128], index: 4, kind: output, shape index: {}]  }
   0x1   :  { %10 = vsyncpa [#allocation5], 0  ;;  %s21_s17 = sshll.u32 %s1562_s3, 4  ;;  %s1199_s18 = smov [#allocation3]   ;;  %s22_s17 = int_to_ptr.hbm [resolvable:$true] %s21_s17 }
   0x2   :  { %s23_s19 = sshll.u32 %s1199_s18, 4  ;;  %s1200_s20 = smov 256   ;;  %s24_s19 = int_to_ptr.vmem [resolvable:$true] %s23_s19 }
   0x3   :  { %s1201_s21 = smov 16  }
   0x4   :  { %29 = dma.hbm_to_vmem [thread:$0]  %s22_s17, 2048, %s24_s19, [#allocation4], %s1200_s20, %s1200_s20, %s1201_s21  }
   0x5   :  { %1195 = dma.done.wait [#allocation4], 2048  }
   0x6   :  { %1196 = vsyncadd [#allocation4], 4294965248  ;;  %v1234_v0 = vld [vmem:[#allocation3 + $0x70] sm:$0xff]  ;;  %v1236_v1 = vld [vmem:[#allocation3 + $0x78] sm:$0xff]  ;;  %vm77_vm0 = vcmask 1040384   ;;  %vm208_vm1 = vcmask 523264   ;;  %v198_v40 = vlaneseq }
   0x7   :  { %v1238_v2 = vld [vmem:[#allocation3 + $0x60] sm:$0xff]  ;;  %219 = vmatpush.msra.mxu2 %v1234_v0  ;;  %239 = vmatpush.msra.mxu3 %v1236_v1  ;;  %v1242_v3 = vld [vmem:[#allocation3 + $0x68] sm:$0xff]  ;;  %v1244_v4 = vld [vmem:[#allocation3 + $0x50] sm:$0xff]  ;;  %vm52_vm2 = vcmask 269312   ;;  %s980_s8 = sshll.u32 %s1563_s4, 4  ;;  %s1205_s9 = smov 8   ;;  %s981_s8 = int_to_ptr.hbm [resolvable:$true] %s980_s8 }
   0x8   :  { %v1246_v5 = vld [vmem:[#allocation3 + $0x58] sm:$0xff]  ;;  %v1250_v6 = vld [vmem:[#allocation3 + $0x40] sm:$0xff]  ;;  %v1252_v7 = vld [vmem:[#allocation3 + $0x48] sm:$0xff]  ;;  %v1386_v43 = vand.u32 127, %v198_v40 }
   0x9   :  { %220 = vmatpush.msra.mxu2 %v1238_v2  ;;  %240 = vmatpush.msra.mxu3 %v1242_v3  ;;  %v50_v8 = vld [vmem:[%s1561_s2 + $0x40] sm:$0x1]  ;;  %v51_v9 = vld [vmem:[%s1561_s2 + $0x48] sm:$0x1]  ;;  %v48_v10 = vld [vmem:[%s1561_s2 + $0x30] sm:$0xff] }
   0xa   :  { %v49_v11 = vld [vmem:[%s1561_s2 + $0x38] sm:$0xff]  ;;  %v1268_v12 = vld [vmem:[#allocation3 + $0x30] sm:$0xff]  ;;  %993 = vmatpush.msk.msra.mxu0 %vm77_vm0, %v50_v8  ;;  %1002 = vmatpush.msk.msra.mxu1 %vm77_vm0, %v51_v9  ;;  %v1050_v14 = vld [vmem:[%s1560_s1] ss:$0 sm:$0xff]  ;;  %vm200_vm5 = vcmp.lt.s32.totalorder %v1386_v43, 64  ;;  %s1204_s1 = smov 128  }
   0xb   :  { %221 = vmatpush.msra.mxu2 %v1244_v4  ;;  %241 = vmatpush.msra.mxu3 %v1246_v5  ;;  %v1270_v13 = vld [vmem:[#allocation3 + $0x38] sm:$0xff]  ;;  %v46_v15 = vld [vmem:[%s1561_s2 + $0x20] sm:$0xff]  ;;  %v47_v16 = vld [vmem:[%s1561_s2 + $0x28] sm:$0xff]  ;;  %205 = vst [vmem:[#allocation6] sm:$0xff] %v1050_v14 }
   0xc   :  { %v1283_v17 = vld [vmem:[#allocation3 + $0x20] sm:$0xff]  ;;  %v1285_v18 = vld [vmem:[#allocation3 + $0x28] sm:$0xff]  ;;  %96 = vmatpush.msra.mxu0 %v48_v10  ;;  %137 = vmatpush.msra.mxu1 %v49_v11  ;;  %v44_v19 = vld [vmem:[%s1561_s2 + $0x10] sm:$0xff] }
   0xd   :  { %222 = vmatpush.msra.mxu2 %v1250_v6  ;;  %242 = vmatpush.msra.mxu3 %v1252_v7  ;;  %v45_v20 = vld [vmem:[%s1561_s2 + $0x18] sm:$0xff]  ;;  %v1295_v21 = vld [vmem:[#allocation3 + $0x10] sm:$0xff]  ;;  %v42_v23 = vld [vmem:[%s1561_s2] sm:$0xff] }
   0xe   :  { %v1297_v22 = vld [vmem:[#allocation3 + $0x18] sm:$0xff]  ;;  %97 = vmatpush.msra.mxu0 %v46_v15  ;;  %138 = vmatpush.msra.mxu1 %v47_v16  ;;  %v43_v24 = vld [vmem:[%s1561_s2 + $0x8] sm:$0xff]  ;;  %v1307_v25 = vld [vmem:[#allocation3] sm:$0xff]  ;;  %s1202_s2 = smov 64  }
   0xf   :  { %223 = vmatpush.msra.mxu2 %v1268_v12  ;;  %243 = vmatpush.msra.mxu3 %v1270_v13  ;;  %v1309_v26 = vld [vmem:[#allocation3 + $0x8] sm:$0xff]  ;;  %v34_v27 = vld [vmem:[%s1559_s0] sm:$0xff] }
  0x10   :  { %98 = vmatpush.msra.mxu0 %v44_v19  ;;  %139 = vmatpush.msra.mxu1 %v45_v20  ;;  %v35_v10 = vld [vmem:[%s1559_s0 + $0x8] sm:$0xff] }
  0x11   :  { %224 = vmatpush.msra.mxu2 %v1283_v17  ;;  %244 = vmatpush.msra.mxu3 %v1285_v18 }
  0x12   :  { %99 = vmatpush.msra.mxu0 %v42_v23  ;;  %140 = vmatpush.msra.mxu1 %v43_v24 }
  0x13   :  { %225 = vmatpush.msra.mxu2 %v1295_v21  ;;  %245 = vmatpush.msra.mxu3 %v1297_v22 }
  0x14   :  { %994 = vmatmul.msk.f32.vlgmr.msra.gmra.mxu0 %vm52_vm2, %v34_v27  ;;  %1003 = vmatmul.msk.f32.vlgmr.msra.gmra.mxu1 %vm52_vm2, %v34_v27 }
  0x15   :  { %226 = vmatpush.msra.mxu2 %v1307_v25  ;;  %246 = vmatpush.msra.mxu3 %v1309_v26 }
  0x16   :  { %1011 = vmatmul.msk.f32.vlgmr.msra.gmra.mxu2 %vm208_vm1, %v1050_v14  ;;  %1012 = vmatmul.msk.f32.vlgmr.msra.gmra.mxu3 %vm208_vm1, %v1050_v14 }
  0x17   :  { %315 = vmatpush.msrb.mxu2 %v1234_v0  ;;  %335 = vmatpush.msrb.mxu3 %v1236_v1 }
  0x18   :  { %603 = vmatpush.msrb.mxu0 %v1234_v0  ;;  %623 = vmatpush.msrb.mxu1 %v1236_v1 }
  0x19   :  { %316 = vmatpush.msrb.mxu2 %v1238_v2  ;;  %336 = vmatpush.msrb.mxu3 %v1242_v3 }
  0x1a   :  { %604 = vmatpush.msrb.mxu0 %v1238_v2  ;;  %624 = vmatpush.msrb.mxu1 %v1242_v3 }
  0x1b   :  { %317 = vmatpush.msrb.mxu2 %v1244_v4  ;;  %337 = vmatpush.msrb.mxu3 %v1246_v5 }
  0x1c   :  { %605 = vmatpush.msrb.mxu0 %v1244_v4  ;;  %625 = vmatpush.msrb.mxu1 %v1246_v5 }
  0x1d   :  { %318 = vmatpush.msrb.mxu2 %v1250_v6  ;;  %338 = vmatpush.msrb.mxu3 %v1252_v7 }
  0x1e   :  { %606 = vmatpush.msrb.mxu0 %v1250_v6  ;;  %626 = vmatpush.msrb.mxu1 %v1252_v7 }
  0x1f   :  { %319 = vmatpush.msrb.mxu2 %v1268_v12  ;;  %339 = vmatpush.msrb.mxu3 %v1270_v13 }
  0x20   :  { %607 = vmatpush.msrb.mxu0 %v1268_v12  ;;  %627 = vmatpush.msrb.mxu1 %v1270_v13 }
  0x21   :  { %320 = vmatpush.msrb.mxu2 %v1283_v17  ;;  %340 = vmatpush.msrb.mxu3 %v1285_v18 }
  0x22   :  { %608 = vmatpush.msrb.mxu0 %v1283_v17  ;;  %628 = vmatpush.msrb.mxu1 %v1285_v18 }
  0x23   :  { %321 = vmatpush.msrb.mxu2 %v1295_v21  ;;  %341 = vmatpush.msrb.mxu3 %v1297_v22 }
  0x24   :  { %609 = vmatpush.msrb.mxu0 %v1295_v21  ;;  %629 = vmatpush.msrb.mxu1 %v1297_v22 }
  0x25   :  { %322 = vmatpush.msrb.mxu2 %v1307_v25  ;;  %342 = vmatpush.msrb.mxu3 %v1309_v26 }
  0x26   :  { %610 = vmatpush.msrb.mxu0 %v1307_v25  ;;  %630 = vmatpush.msrb.mxu1 %v1309_v26 }
  0x27   :  { %411 = vmatpush.msra.mxu2 %v1234_v0  ;;  %431 = vmatpush.msra.mxu3 %v1236_v1 }
  0x28   :  { %795 = vmatpush.msra.mxu0 %v1234_v0  ;;  %815 = vmatpush.msra.mxu1 %v1236_v1 }
  0x29   :  { %412 = vmatpush.msra.mxu2 %v1238_v2  ;;  %432 = vmatpush.msra.mxu3 %v1242_v3 }
  0x2a   :  { %796 = vmatpush.msra.mxu0 %v1238_v2  ;;  %816 = vmatpush.msra.mxu1 %v1242_v3 }
  0x2b   :  { %413 = vmatpush.msra.mxu2 %v1244_v4  ;;  %433 = vmatpush.msra.mxu3 %v1246_v5 }
  0x2c   :  { %797 = vmatpush.msra.mxu0 %v1244_v4  ;;  %817 = vmatpush.msra.mxu1 %v1246_v5 }
  0x2d   :  { %414 = vmatpush.msra.mxu2 %v1250_v6  ;;  %434 = vmatpush.msra.mxu3 %v1252_v7 }
  0x2e   :  { %798 = vmatpush.msra.mxu0 %v1250_v6  ;;  %818 = vmatpush.msra.mxu1 %v1252_v7 }
  0x2f   :  { %415 = vmatpush.msra.mxu2 %v1268_v12  ;;  %435 = vmatpush.msra.mxu3 %v1270_v13 }
  0x30   :  { %799 = vmatpush.msra.mxu0 %v1268_v12  ;;  %819 = vmatpush.msra.mxu1 %v1270_v13 }
  0x31   :  { %416 = vmatpush.msra.mxu2 %v1283_v17  ;;  %436 = vmatpush.msra.mxu3 %v1285_v18 }
  0x32   :  { %800 = vmatpush.msra.mxu0 %v1283_v17  ;;  %820 = vmatpush.msra.mxu1 %v1285_v18 }
  0x33   :  { %417 = vmatpush.msra.mxu2 %v1295_v21  ;;  %437 = vmatpush.msra.mxu3 %v1297_v22 }
  0x34   :  { %801 = vmatpush.msra.mxu0 %v1295_v21  ;;  %821 = vmatpush.msra.mxu1 %v1297_v22 }
  0x35   :  { %418 = vmatpush.msra.mxu2 %v1307_v25  ;;  %438 = vmatpush.msra.mxu3 %v1309_v26 }
  0x36   :  { %802 = vmatpush.msra.mxu0 %v1307_v25  ;;  %822 = vmatpush.msra.mxu1 %v1309_v26 }
  0x37   :  { %995 = vmatmul.msk.f32.gmra.mxu0 %vm52_vm2, %v35_v10  ;;  %1004 = vmatmul.msk.f32.gmra.mxu1 %vm52_vm2, %v35_v10 }
  0x91   :  { %v101_v28 = vpop.f32.mrf.mxu0  ;;  %v142_v29 = vpop.f32.mrf.mxu1 }
  0x99   :  { %v228_v30 = vpop.f32.mrf.mxu2  ;;  %v248_v31 = vpop.f32.mrf.mxu3 }
  0x9a   :  { %v251_v32 = vadd.f32 %v228_v30, %v101_v28  ;;  %v252_v33 = vadd.f32 %v248_v31, %v142_v29 }
  0x9c   :  { %v1013_v34 = vmul.f32 -1.442695, %v251_v32  ;;  %v1014_v35 = vmul.f32 -1.442695, %v252_v33 }
  0x9e   :  { %1051 = vpow2.f32 %v1013_v34 }
  0x9f   :  { %1053 = vpow2.f32 %v1014_v35 }
  0xa4   :  { %v1052_v36 = vpop.eup %1051 }
  0xa5   :  { %v1054_v37 = vpop.eup %1053  ;;  %v256_v38 = vadd.f32 1.0, %v1052_v36 }
  0xa6   :  { %v275_v39 = vadd.f32 1.0, %v1054_v37 }
  0xa7   :  { %1055 = vrcp.f32 %v256_v38  ;;  %v268_v47 = vand.u32 2147483648, %v256_v38  ;;  %v266_v53 = vand.u32 2147483647, %v256_v38  ;;  %vm262_vm7 = vweird.f32 %v256_v38 }
  0xa8   :  { %1057 = vrcp.f32 %v275_v39  ;;  %v287_v48 = vand.u32 2147483648, %v275_v39  ;;  %vm281_vm3 = vweird.f32 %v275_v39  ;;  %v285_v50 = vand.u32 2147483647, %v275_v39 }
  0xa9   :  { %1059 = vtanh.f32 %v252_v33  ;;  %v269_v57 = vor.u32 1.1754944e-38, %v268_v47  ;;  %vm267_vm11 = vcmp.eq.f32.partialorder %v266_v53, 8.507059e+37 }
  0xaa   :  { %v288_v56 = vor.u32 1.1754944e-38, %v287_v48  ;;  %vm286_vm10 = vcmp.eq.f32.partialorder %v285_v50, 8.507059e+37 }
  0xad   :  { %v1056_v41 = vpop.eup %1055 }
  0xae   :  { %v1058_v42 = vpop.eup %1057  ;;  %v258_v44 = vmul.f32 %v1056_v41, %v256_v38  ;;  %vm263_vm6 = vweird.f32 %v1056_v41 }
  0xaf   :  { %v277_v45 = vmul.f32 %v1058_v42, %v275_v39  ;;  %vm282_vm4 = vweird.f32 %v1058_v42  ;;  %v1060_v51 = vpop.eup %1059  ;;  %vm264_vm9 = vmor %vm262_vm7, %vm263_vm6 }
  0xb0   :  { %v259_v46 = vsub.f32 1.0, %v258_v44  ;;  %vm283_vm8 = vmor %vm281_vm3, %vm282_vm4  ;;  %v293_v58 = vsel %vm200_vm5, 0.0, %v1060_v51 }
  0xb1   :  { %v278_v49 = vsub.f32 1.0, %v277_v45 }
  0xb2   :  { %v260_v52 = vmul.f32 %v1056_v41, %v259_v46 }
  0xb3   :  { %v279_v54 = vmul.f32 %v1058_v42, %v278_v49 }
  0xb4   :  { %v261_v55 = vadd.f32 %v1056_v41, %v260_v52  ;;  %v104_v19 = vpop.f32.mrf.mxu0  ;;  %v145_v20 = vpop.f32.mrf.mxu1 }
  0xb5   :  { %v280_v59 = vadd.f32 %v1058_v42, %v279_v54 }
  0xb6   :  { %v265_v60 = vsel %vm264_vm9, %v1056_v41, %v261_v55 }
  0xb7   :  { %v270_v61 = vsel %vm267_vm11, %v269_v57, %v265_v60  ;;  %v284_v62 = vsel %vm283_vm8, %v1058_v42, %v280_v59  ;;  %v36_v60 = vld [vmem:[%s1559_s0 + $0x10] sm:$0xff] }
  0xb8   :  { %v294_v63 = vmul.f32 %v293_v58, %v270_v61  ;;  %v289_v8 = vsel %vm286_vm10, %v288_v56, %v284_v62  ;;  %996 = vmatmul.msk.f32.gmra.mxu0 %vm52_vm2, %v36_v60  ;;  %1005 = vmatmul.msk.f32.gmra.mxu1 %vm52_vm2, %v36_v60 }
  0xb9   :  { %v292_v9 = vsel %vm200_vm5, %v289_v8, %v1060_v51 }
  0xba   :  { %295 = vrot.lane.b32.xlu0 %v294_v63, %s1202_s2 }
 0x12c   :  { %v296_v11 = vpop.permute.xlu0 %295 }
 0x12d   :  { %v1399_v14 = vadd.f32 %v296_v11, %v294_v63 }
 0x12f   :  { %1061 = vtanh.f32 %v1399_v14 }
 0x135   :  { %v1062_v15 = vpop.eup %1061  ;;  %v148_v10 = vpop.f32.mrf.mxu1 }
 0x136   :  { %v299_v16 = vmul.f32 %v1062_v15, %v292_v9  ;;  %v107_v9 = vpop.f32.mrf.mxu0 }
 0x138   :  { %301 = vst [vmem:[#allocation6 + $0x8] sm:$0xff] %v299_v16  ;;  %1015 = vmatmul.msk.f32.vlgmr.msrb.gmra.mxu2 %vm208_vm1, %v299_v16  ;;  %1016 = vmatmul.msk.f32.vlgmr.msrb.gmra.mxu3 %vm208_vm1, %v299_v16 }
 0x139   :  { %507 = vmatpush.msrb.mxu2 %v1234_v0  ;;  %527 = vmatpush.msrb.mxu3 %v1236_v1 }
 0x13b   :  { %508 = vmatpush.msrb.mxu2 %v1238_v2  ;;  %528 = vmatpush.msrb.mxu3 %v1242_v3 }
 0x13d   :  { %509 = vmatpush.msrb.mxu2 %v1244_v4  ;;  %529 = vmatpush.msrb.mxu3 %v1246_v5 }
 0x13f   :  { %510 = vmatpush.msrb.mxu2 %v1250_v6  ;;  %530 = vmatpush.msrb.mxu3 %v1252_v7 }
 0x141   :  { %511 = vmatpush.msrb.mxu2 %v1268_v12  ;;  %531 = vmatpush.msrb.mxu3 %v1270_v13 }
 0x143   :  { %512 = vmatpush.msrb.mxu2 %v1283_v17  ;;  %532 = vmatpush.msrb.mxu3 %v1285_v18 }
 0x145   :  { %513 = vmatpush.msrb.mxu2 %v1295_v21  ;;  %533 = vmatpush.msrb.mxu3 %v1297_v22 }
 0x147   :  { %514 = vmatpush.msrb.mxu2 %v1307_v25  ;;  %534 = vmatpush.msrb.mxu3 %v1309_v26 }
 0x1bb   :  { %v324_v23 = vpop.f32.mrf.mxu2  ;;  %v344_v24 = vpop.f32.mrf.mxu3 }
 0x1bc   :  { %v347_v27 = vadd.f32 %v324_v23, %v104_v19  ;;  %v348_v28 = vadd.f32 %v344_v24, %v145_v20 }
 0x1be   :  { %v1017_v29 = vmul.f32 -1.442695, %v347_v27  ;;  %v1018_v30 = vmul.f32 -1.442695, %v348_v28 }
 0x1c0   :  { %1063 = vpow2.f32 %v1017_v29 }
 0x1c1   :  { %1065 = vpow2.f32 %v1018_v30 }
 0x1c6   :  { %v1064_v31 = vpop.eup %1063 }
 0x1c7   :  { %v1066_v32 = vpop.eup %1065  ;;  %v352_v33 = vadd.f32 1.0, %v1064_v31 }
 0x1c8   :  { %v371_v34 = vadd.f32 1.0, %v1066_v32 }
 0x1c9   :  { %1067 = vrcp.f32 %v352_v33  ;;  %v364_v41 = vand.u32 2147483648, %v352_v33  ;;  %v362_v45 = vand.u32 2147483647, %v352_v33  ;;  %vm358_vm14 = vweird.f32 %v352_v33 }
 0x1ca   :  { %1069 = vrcp.f32 %v371_v34  ;;  %v383_v42 = vand.u32 2147483648, %v371_v34  ;;  %v381_v47 = vand.u32 2147483647, %v371_v34  ;;  %vm377_vm15 = vweird.f32 %v371_v34 }
 0x1cb   :  { %1071 = vtanh.f32 %v348_v28  ;;  %v365_v50 = vor.u32 1.1754944e-38, %v364_v41  ;;  %vm363_vm3 = vcmp.eq.f32.partialorder %v362_v45, 8.507059e+37 }
 0x1cc   :  { %v384_v53 = vor.u32 1.1754944e-38, %v383_v42  ;;  %vm382_vm6 = vcmp.eq.f32.partialorder %v381_v47, 8.507059e+37 }
 0x1cf   :  { %v1068_v35 = vpop.eup %1067 }
 0x1d0   :  { %v1070_v36 = vpop.eup %1069  ;;  %v354_v37 = vmul.f32 %v1068_v35, %v352_v33  ;;  %vm359_vm12 = vweird.f32 %v1068_v35 }
 0x1d1   :  { %v373_v38 = vmul.f32 %v1070_v36, %v371_v34  ;;  %vm378_vm13 = vweird.f32 %v1070_v36  ;;  %v1072_v48 = vpop.eup %1071  ;;  %vm360_vm0 = vmor %vm358_vm14, %vm359_vm12 }
 0x1d2   :  { %v355_v39 = vsub.f32 1.0, %v354_v37  ;;  %vm379_vm4 = vmor %vm377_vm15, %vm378_vm13  ;;  %v389_v55 = vsel %vm200_vm5, %v1399_v14, %v1072_v48 }
 0x1d3   :  { %v374_v40 = vsub.f32 1.0, %v373_v38 }
 0x1d4   :  { %v356_v44 = vmul.f32 %v1068_v35, %v355_v39 }
 0x1d5   :  { %v375_v46 = vmul.f32 %v1070_v36, %v374_v40 }
 0x1d6   :  { %v357_v49 = vadd.f32 %v1068_v35, %v356_v44 }
 0x1d7   :  { %v376_v51 = vadd.f32 %v1070_v36, %v375_v46 }
 0x1d8   :  { %v361_v52 = vsel %vm360_vm0, %v1068_v35, %v357_v49 }
 0x1d9   :  { %v366_v54 = vsel %vm363_vm3, %v365_v50, %v361_v52  ;;  %v380_v56 = vsel %vm379_vm4, %v1070_v36, %v376_v51 }
 0x1da   :  { %v390_v57 = vmul.f32 %v389_v55, %v366_v54  ;;  %v385_v58 = vsel %vm382_vm6, %v384_v53, %v380_v56  ;;  %v37_v54 = vld [vmem:[%s1559_s0 + $0x18] sm:$0xff] }
 0x1db   :  { %v388_v59 = vsel %vm200_vm5, %v385_v58, %v1072_v48  ;;  %997 = vmatmul.msk.f32.gmra.mxu0 %vm52_vm2, %v37_v54  ;;  %1006 = vmatmul.msk.f32.gmra.mxu1 %vm52_vm2, %v37_v54 }
 0x1dc   :  { %391 = vrot.lane.b32.xlu0 %v390_v57, %s1202_s2 }
 0x24e   :  { %v392_v61 = vpop.permute.xlu0 %391 }
 0x24f   :  { %v1431_v62 = vadd.f32 %v392_v61, %v390_v57 }
 0x251   :  { %1073 = vtanh.f32 %v1431_v62 }
 0x257   :  { %v1074_v63 = vpop.eup %1073 }
 0x258   :  { %v395_v8 = vmul.f32 %v1074_v63, %v388_v59 }
 0x25a   :  { %397 = vst [vmem:[#allocation6 + $0x10] sm:$0xff] %v395_v8  ;;  %1019 = vmatmul.msk.f32.vlgmr.msra.gmra.mxu2 %vm208_vm1, %v395_v8  ;;  %1020 = vmatmul.msk.f32.vlgmr.msra.gmra.mxu3 %vm208_vm1, %v395_v8 }
 0x25b   :  { %699 = vmatpush.msra.mxu2 %v1234_v0  ;;  %719 = vmatpush.msra.mxu3 %v1236_v1 }
 0x25d   :  { %700 = vmatpush.msra.mxu2 %v1238_v2  ;;  %720 = vmatpush.msra.mxu3 %v1242_v3 }
 0x25f   :  { %701 = vmatpush.msra.mxu2 %v1244_v4  ;;  %721 = vmatpush.msra.mxu3 %v1246_v5 }
 0x261   :  { %702 = vmatpush.msra.mxu2 %v1250_v6  ;;  %722 = vmatpush.msra.mxu3 %v1252_v7 }
 0x263   :  { %703 = vmatpush.msra.mxu2 %v1268_v12  ;;  %723 = vmatpush.msra.mxu3 %v1270_v13 }
 0x265   :  { %704 = vmatpush.msra.mxu2 %v1283_v17  ;;  %724 = vmatpush.msra.mxu3 %v1285_v18 }
 0x267   :  { %705 = vmatpush.msra.mxu2 %v1295_v21  ;;  %725 = vmatpush.msra.mxu3 %v1297_v22 }
 0x269   :  { %706 = vmatpush.msra.mxu2 %v1307_v25  ;;  %726 = vmatpush.msra.mxu3 %v1309_v26 }
 0x2dd   :  { %v420_v11 = vpop.f32.mrf.mxu2  ;;  %v440_v14 = vpop.f32.mrf.mxu3 }
 0x2de   :  { %v443_v15 = vadd.f32 %v420_v11, %v107_v9  ;;  %v444_v16 = vadd.f32 %v440_v14, %v148_v10 }
 0x2e0   :  { %v1021_v19 = vmul.f32 -1.442695, %v443_v15  ;;  %v1022_v20 = vmul.f32 -1.442695, %v444_v16 }
 0x2e2   :  { %1075 = vpow2.f32 %v1021_v19 }
 0x2e3   :  { %1077 = vpow2.f32 %v1022_v20 }
 0x2e8   :  { %v1076_v23 = vpop.eup %1075 }
 0x2e9   :  { %v1078_v24 = vpop.eup %1077  ;;  %v448_v27 = vadd.f32 1.0, %v1076_v23 }
 0x2ea   :  { %v467_v28 = vadd.f32 1.0, %v1078_v24 }
 0x2eb   :  { %1079 = vrcp.f32 %v448_v27  ;;  %v460_v35 = vand.u32 2147483648, %v448_v27  ;;  %v458_v38 = vand.u32 2147483647, %v448_v27  ;;  %vm454_vm9 = vweird.f32 %v448_v27 }
 0x2ec   :  { %1081 = vrcp.f32 %v467_v28  ;;  %v479_v36 = vand.u32 2147483648, %v467_v28  ;;  %v477_v40 = vand.u32 2147483647, %v467_v28  ;;  %vm473_vm10 = vweird.f32 %v467_v28 }
 0x2ed   :  { %1083 = vtanh.f32 %v444_v16  ;;  %v461_v44 = vor.u32 1.1754944e-38, %v460_v35  ;;  %vm459_vm12 = vcmp.eq.f32.partialorder %v458_v38, 8.507059e+37 }
 0x2ee   :  { %v480_v47 = vor.u32 1.1754944e-38, %v479_v36  ;;  %vm478_vm14 = vcmp.eq.f32.partialorder %v477_v40, 8.507059e+37 }
 0x2f1   :  { %v1080_v29 = vpop.eup %1079 }
 0x2f2   :  { %v1082_v30 = vpop.eup %1081  ;;  %v450_v31 = vmul.f32 %v1080_v29, %v448_v27  ;;  %vm455_vm7 = vweird.f32 %v1080_v29 }
 0x2f3   :  { %v469_v32 = vmul.f32 %v1082_v30, %v467_v28  ;;  %vm474_vm8 = vweird.f32 %v1082_v30  ;;  %v1084_v41 = vpop.eup %1083  ;;  %vm456_vm11 = vmor %vm454_vm9, %vm455_vm7 }
 0x2f4   :  { %v451_v33 = vsub.f32 1.0, %v450_v31  ;;  %vm475_vm13 = vmor %vm473_vm10, %vm474_vm8  ;;  %v485_v49 = vsel %vm200_vm5, %v1431_v62, %v1084_v41 }
 0x2f5   :  { %v470_v34 = vsub.f32 1.0, %v469_v32 }
 0x2f6   :  { %v452_v37 = vmul.f32 %v1080_v29, %v451_v33 }
 0x2f7   :  { %v471_v39 = vmul.f32 %v1082_v30, %v470_v34  ;;  %v41_v34 = vld [vmem:[%s1559_s0 + $0x38] sm:$0xff] }
 0x2f8   :  { %v453_v42 = vadd.f32 %v1080_v29, %v452_v37 }
 0x2f9   :  { %v472_v45 = vadd.f32 %v1082_v30, %v471_v39 }
 0x2fa   :  { %v457_v46 = vsel %vm456_vm11, %v1080_v29, %v453_v42 }
 0x2fb   :  { %v462_v48 = vsel %vm459_vm12, %v461_v44, %v457_v46  ;;  %v476_v50 = vsel %vm475_vm13, %v1082_v30, %v472_v45 }
 0x2fc   :  { %v486_v51 = vmul.f32 %v485_v49, %v462_v48  ;;  %v481_v52 = vsel %vm478_vm14, %v480_v47, %v476_v50 }
 0x2fd   :  { %v484_v53 = vsel %vm200_vm5, %v481_v52, %v1084_v41 }
 0x2fe   :  { %487 = vrot.lane.b32.xlu1 %v486_v51, %s1202_s2 }
 0x370   :  { %v488_v55 = vpop.permute.xlu1 %487 }
 0x371   :  { %v1463_v56 = vadd.f32 %v488_v55, %v486_v51 }
 0x373   :  { %1085 = vtanh.f32 %v1463_v56 }
 0x379   :  { %v1086_v57 = vpop.eup %1085 }
 0x37a   :  { %v491_v58 = vmul.f32 %v1086_v57, %v484_v53 }
 0x37c   :  { %493 = vst [vmem:[#allocation6 + $0x18] sm:$0xff] %v491_v58  ;;  %1023 = vmatmul.msk.f32.vlgmr.msrb.gmra.mxu2 %vm208_vm1, %v491_v58  ;;  %1024 = vmatmul.msk.f32.vlgmr.msrb.gmra.mxu3 %vm208_vm1, %v491_v58 }
 0x37d   :  { %891 = vmatpush.msrb.mxu2 %v1234_v0  ;;  %911 = vmatpush.msrb.mxu3 %v1236_v1  ;;  %v110_v0 = vpop.f32.mrf.mxu0  ;;  %v151_v1 = vpop.f32.mrf.mxu1 }
 0x37f   :  { %892 = vmatpush.msrb.mxu2 %v1238_v2  ;;  %912 = vmatpush.msrb.mxu3 %v1242_v3 }
 0x381   :  { %893 = vmatpush.msrb.mxu2 %v1244_v4  ;;  %913 = vmatpush.msrb.mxu3 %v1246_v5 }
 0x383   :  { %894 = vmatpush.msrb.mxu2 %v1250_v6  ;;  %914 = vmatpush.msrb.mxu3 %v1252_v7  ;;  %v38_v6 = vld [vmem:[%s1559_s0 + $0x20] sm:$0xff] }
 0x384   :  { %998 = vmatmul.msk.f32.gmra.mxu0 %vm52_vm2, %v38_v6  ;;  %1007 = vmatmul.msk.f32.gmra.mxu1 %vm52_vm2, %v38_v6 }
 0x385   :  { %895 = vmatpush.msrb.mxu2 %v1268_v12  ;;  %915 = vmatpush.msrb.mxu3 %v1270_v13  ;;  %v39_v13 = vld [vmem:[%s1559_s0 + $0x28] sm:$0xff] }
 0x387   :  { %896 = vmatpush.msrb.mxu2 %v1283_v17  ;;  %916 = vmatpush.msrb.mxu3 %v1285_v18 }
 0x389   :  { %897 = vmatpush.msrb.mxu2 %v1295_v21  ;;  %917 = vmatpush.msrb.mxu3 %v1297_v22 }
 0x38b   :  { %898 = vmatpush.msrb.mxu2 %v1307_v25  ;;  %918 = vmatpush.msrb.mxu3 %v1309_v26  ;;  %v40_v25 = vld [vmem:[%s1559_s0 + $0x30] sm:$0xff]  ;;  %s1203_s0 = smov [#allocation6]  }
 0x38c   :  { %999 = vmatmul.msk.f32.gmra.mxu0 %vm52_vm2, %v39_v13  ;;  %1008 = vmatmul.msk.f32.gmra.mxu1 %vm52_vm2, %v39_v13  ;;  %s978_s5 = sshll.u32 %s1203_s0, 4  ;;  %s979_s5 = int_to_ptr.vmem [resolvable:$true] %s978_s5 }
 0x394   :  { %1000 = vmatmul.msk.f32.gmra.mxu0 %vm52_vm2, %v40_v25  ;;  %1009 = vmatmul.msk.f32.gmra.mxu1 %vm52_vm2, %v40_v25 }
 0x39c   :  { %1001 = vmatmul.msk.f32.gmra.mxu0 %vm52_vm2, %v41_v34  ;;  %1010 = vmatmul.msk.f32.gmra.mxu1 %vm52_vm2, %v41_v34 }
 0x3ff   :  { %v516_v2 = vpop.f32.mrf.mxu2  ;;  %v536_v3 = vpop.f32.mrf.mxu3 }
 0x400   :  { %v539_v4 = vadd.f32 %v516_v2, %v110_v0  ;;  %v540_v5 = vadd.f32 %v536_v3, %v151_v1 }
 0x401   :  { %v113_v39 = vpop.f32.mrf.mxu0  ;;  %v154_v40 = vpop.f32.mrf.mxu1 }
 0x402   :  { %v1025_v7 = vmul.f32 -1.442695, %v539_v4  ;;  %v1026_v12 = vmul.f32 -1.442695, %v540_v5 }
 0x404   :  { %1087 = vpow2.f32 %v1025_v7 }
 0x405   :  { %1089 = vpow2.f32 %v1026_v12 }
 0x409   :  { %v1512_v41 = vpop.f32.mrf.mxu0  ;;  %v1514_v42 = vpop.f32.mrf.mxu1 }
 0x40a   :  { %v1088_v17 = vpop.eup %1087 }
 0x40b   :  { %v1090_v18 = vpop.eup %1089  ;;  %v544_v21 = vadd.f32 1.0, %v1088_v17 }
 0x40c   :  { %v563_v22 = vadd.f32 1.0, %v1090_v18 }
 0x40d   :  { %1091 = vrcp.f32 %v544_v21  ;;  %v556_v8 = vand.u32 2147483648, %v544_v21  ;;  %v554_v10 = vand.u32 2147483647, %v544_v21  ;;  %vm550_vm3 = vweird.f32 %v544_v21 }
 0x40e   :  { %1093 = vrcp.f32 %v563_v22  ;;  %v575_v11 = vand.u32 2147483648, %v563_v22  ;;  %v573_v15 = vand.u32 2147483647, %v563_v22  ;;  %vm569_vm6 = vweird.f32 %v563_v22 }
 0x40f   :  { %1095 = vtanh.f32 %v540_v5  ;;  %v557_v20 = vor.u32 1.1754944e-38, %v556_v8  ;;  %vm555_vm7 = vcmp.eq.f32.partialorder %v554_v10, 8.507059e+37 }
 0x410   :  { %v576_v27 = vor.u32 1.1754944e-38, %v575_v11  ;;  %vm574_vm9 = vcmp.eq.f32.partialorder %v573_v15, 8.507059e+37 }
 0x411   :  { %v1516_v44 = vpop.f32.mrf.mxu0  ;;  %v1518_v45 = vpop.f32.mrf.mxu1 }
 0x413   :  { %v1092_v26 = vpop.eup %1091 }
 0x414   :  { %v1094_v59 = vpop.eup %1093  ;;  %v546_v60 = vmul.f32 %v1092_v26, %v544_v21  ;;  %vm551_vm15 = vweird.f32 %v1092_v26 }
 0x415   :  { %v565_v61 = vmul.f32 %v1094_v59, %v563_v22  ;;  %vm570_vm0 = vweird.f32 %v1094_v59  ;;  %v1096_v16 = vpop.eup %1095  ;;  %vm552_vm4 = vmor %vm550_vm3, %vm551_vm15 }
 0x416   :  { %v547_v62 = vsub.f32 1.0, %v546_v60  ;;  %vm571_vm8 = vmor %vm569_vm6, %vm570_vm0  ;;  %v581_v29 = vsel %vm200_vm5, %v1463_v56, %v1096_v16 }
 0x417   :  { %v566_v63 = vsub.f32 1.0, %v565_v61 }
 0x418   :  { %v548_v9 = vmul.f32 %v1092_v26, %v547_v62 }
 0x419   :  { %v567_v14 = vmul.f32 %v1094_v59, %v566_v63  ;;  %v1520_v46 = vpop.f32.mrf.mxu0  ;;  %v1522_v47 = vpop.f32.mrf.mxu1 }
 0x41a   :  { %v549_v19 = vadd.f32 %v1092_v26, %v548_v9 }
 0x41b   :  { %v568_v23 = vadd.f32 %v1094_v59, %v567_v14 }
 0x41c   :  { %v553_v24 = vsel %vm552_vm4, %v1092_v26, %v549_v19 }
 0x41d   :  { %v558_v28 = vsel %vm555_vm7, %v557_v20, %v553_v24  ;;  %v572_v30 = vsel %vm571_vm8, %v1094_v59, %v568_v23 }
 0x41e   :  { %v582_v31 = vmul.f32 %v581_v29, %v558_v28  ;;  %v577_v32 = vsel %vm574_vm9, %v576_v27, %v572_v30 }
 0x41f   :  { %v580_v33 = vsel %vm200_vm5, %v577_v32, %v1096_v16 }
 0x420   :  { %583 = vrot.lane.b32.xlu1 %v582_v31, %s1202_s2 }
 0x492   :  { %v584_v35 = vpop.permute.xlu1 %583 }
 0x493   :  { %v585_v36 = vadd.f32 %v584_v35, %v582_v31 }
 0x495   :  { %1097 = vtanh.f32 %v585_v36 }
 0x49b   :  { %v1098_v37 = vpop.eup %1097 }
 0x49c   :  { %v587_v38 = vmul.f32 %v1098_v37, %v580_v33 }
 0x49e   :  { %589 = vst [vmem:[#allocation6 + $0x20] sm:$0xff] %v587_v38  ;;  %1027 = vmatmul.msk.f32.vlgmr.msrb.gmra.mxu0 %vm208_vm1, %v587_v38  ;;  %1028 = vmatmul.msk.f32.vlgmr.msrb.gmra.mxu1 %vm208_vm1, %v587_v38 }
 0x51b   :  { %v612_v48 = vpop.f32.mrf.mxu0  ;;  %v632_v49 = vpop.f32.mrf.mxu1 }
 0x51c   :  { %v635_v50 = vadd.f32 %v612_v48, %v113_v39  ;;  %v636_v51 = vadd.f32 %v632_v49, %v154_v40 }
 0x51e   :  { %v1029_v52 = vmul.f32 -1.442695, %v635_v50  ;;  %v1030_v53 = vmul.f32 -1.442695, %v636_v51 }
 0x520   :  { %1099 = vpow2.f32 %v1029_v52 }
 0x521   :  { %1101 = vpow2.f32 %v1030_v53 }
 0x526   :  { %v1100_v54 = vpop.eup %1099 }
 0x527   :  { %v1102_v55 = vpop.eup %1101  ;;  %v640_v56 = vadd.f32 1.0, %v1100_v54 }
 0x528   :  { %v659_v57 = vadd.f32 1.0, %v1102_v55 }
 0x529   :  { %1103 = vrcp.f32 %v640_v56  ;;  %v652_v5 = vand.u32 2147483648, %v640_v56  ;;  %v650_v12 = vand.u32 2147483647, %v640_v56  ;;  %vm646_vm11 = vweird.f32 %v640_v56 }
 0x52a   :  { %1105 = vrcp.f32 %v659_v57  ;;  %v671_v6 = vand.u32 2147483648, %v659_v57  ;;  %v669_v17 = vand.u32 2147483647, %v659_v57  ;;  %vm665_vm12 = vweird.f32 %v659_v57 }
 0x52b   :  { %1107 = vtanh.f32 %v636_v51  ;;  %v653_v22 = vor.u32 1.1754944e-38, %v652_v5  ;;  %vm651_vm14 = vcmp.eq.f32.partialorder %v650_v12, 8.507059e+37 }
 0x52c   :  { %v672_v59 = vor.u32 1.1754944e-38, %v671_v6  ;;  %vm670_vm0 = vcmp.eq.f32.partialorder %v669_v17, 8.507059e+37 }
 0x52f   :  { %v1104_v58 = vpop.eup %1103 }
 0x530   :  { %v1106_v0 = vpop.eup %1105  ;;  %v642_v1 = vmul.f32 %v1104_v58, %v640_v56  ;;  %vm647_vm2 = vweird.f32 %v1104_v58 }
 0x531   :  { %v661_v2 = vmul.f32 %v1106_v0, %v659_v57  ;;  %vm666_vm10 = vweird.f32 %v1106_v0  ;;  %v1108_v18 = vpop.eup %1107  ;;  %vm648_vm13 = vmor %vm646_vm11, %vm647_vm2 }
 0x532   :  { %v643_v3 = vsub.f32 1.0, %v642_v1  ;;  %vm667_vm15 = vmor %vm665_vm12, %vm666_vm10  ;;  %v677_v61 = vsel %vm200_vm5, %v585_v36, %v1108_v18 }
 0x533   :  { %v662_v4 = vsub.f32 1.0, %v661_v2 }
 0x534   :  { %v644_v7 = vmul.f32 %v1104_v58, %v643_v3 }
 0x535   :  { %v663_v13 = vmul.f32 %v1106_v0, %v662_v4 }
 0x536   :  { %v645_v21 = vadd.f32 %v1104_v58, %v644_v7 }
 0x537   :  { %v664_v25 = vadd.f32 %v1106_v0, %v663_v13 }
 0x538   :  { %v649_v26 = vsel %vm648_vm13, %v1104_v58, %v645_v21 }
 0x539   :  { %v654_v60 = vsel %vm651_vm14, %v653_v22, %v649_v26  ;;  %v668_v62 = vsel %vm667_vm15, %v1106_v0, %v664_v25 }
 0x53a   :  { %v678_v63 = vmul.f32 %v677_v61, %v654_v60  ;;  %v673_v8 = vsel %vm670_vm0, %v672_v59, %v668_v62 }
 0x53b   :  { %v676_v9 = vsel %vm200_vm5, %v673_v8, %v1108_v18 }
 0x53c   :  { %679 = vrot.lane.b32.xlu2 %v678_v63, %s1202_s2 }
 0x596   :  { %v680_v10 = vpop.permute.xlu2 %679 }
 0x597   :  { %v681_v11 = vadd.f32 %v680_v10, %v678_v63 }
 0x599   :  { %1109 = vtanh.f32 %v681_v11 }
 0x59f   :  { %v1110_v14 = vpop.eup %1109 }
 0x5a0   :  { %v683_v15 = vmul.f32 %v1110_v14, %v676_v9 }
 0x5a2   :  { %685 = vst [vmem:[#allocation6 + $0x28] sm:$0xff] %v683_v15  ;;  %1031 = vmatmul.msk.f32.vlgmr.msra.gmra.mxu2 %vm208_vm1, %v683_v15  ;;  %1032 = vmatmul.msk.f32.vlgmr.msra.gmra.mxu3 %vm208_vm1, %v683_v15 }
 0x625   :  { %v708_v16 = vpop.f32.mrf.mxu2  ;;  %v728_v19 = vpop.f32.mrf.mxu3 }
 0x626   :  { %v731_v20 = vadd.f32 %v708_v16, %v1512_v41  ;;  %v732_v23 = vadd.f32 %v728_v19, %v1514_v42 }
 0x628   :  { %v1033_v24 = vmul.f32 -1.442695, %v731_v20  ;;  %v1034_v27 = vmul.f32 -1.442695, %v732_v23 }
 0x62a   :  { %1111 = vpow2.f32 %v1033_v24 }
 0x62b   :  { %1113 = vpow2.f32 %v1034_v27 }
 0x630   :  { %v1112_v28 = vpop.eup %1111 }
 0x631   :  { %v1114_v29 = vpop.eup %1113  ;;  %v736_v30 = vadd.f32 1.0, %v1112_v28 }
 0x632   :  { %v755_v31 = vadd.f32 1.0, %v1114_v29 }
 0x633   :  { %1115 = vrcp.f32 %v736_v30  ;;  %v748_v38 = vand.u32 2147483648, %v736_v30  ;;  %v746_v41 = vand.u32 2147483647, %v736_v30  ;;  %vm742_vm6 = vweird.f32 %v736_v30 }
 0x634   :  { %1117 = vrcp.f32 %v755_v31  ;;  %v767_v39 = vand.u32 2147483648, %v755_v31  ;;  %v765_v48 = vand.u32 2147483647, %v755_v31  ;;  %vm761_vm7 = vweird.f32 %v755_v31 }
 0x635   :  { %1119 = vtanh.f32 %v732_v23  ;;  %v749_v51 = vor.u32 1.1754944e-38, %v748_v38  ;;  %vm747_vm9 = vcmp.eq.f32.partialorder %v746_v41, 8.507059e+37 }
 0x636   :  { %v768_v54 = vor.u32 1.1754944e-38, %v767_v39  ;;  %vm766_vm10 = vcmp.eq.f32.partialorder %v765_v48, 8.507059e+37 }
 0x639   :  { %v1116_v32 = vpop.eup %1115 }
 0x63a   :  { %v1118_v33 = vpop.eup %1117  ;;  %v738_v34 = vmul.f32 %v1116_v32, %v736_v30  ;;  %vm743_vm3 = vweird.f32 %v1116_v32 }
 0x63b   :  { %v757_v35 = vmul.f32 %v1118_v33, %v755_v31  ;;  %vm762_vm4 = vweird.f32 %v1118_v33  ;;  %v1120_v49 = vpop.eup %1119  ;;  %vm744_vm8 = vmor %vm742_vm6, %vm743_vm3 }
 0x63c   :  { %v739_v36 = vsub.f32 1.0, %v738_v34  ;;  %vm763_vm2 = vmor %vm761_vm7, %vm762_vm4  ;;  %v773_v56 = vsel %vm200_vm5, %v681_v11, %v1120_v49 }
 0x63d   :  { %v758_v37 = vsub.f32 1.0, %v757_v35 }
 0x63e   :  { %v740_v40 = vmul.f32 %v1116_v32, %v739_v36 }
 0x63f   :  { %v759_v42 = vmul.f32 %v1118_v33, %v758_v37 }
 0x640   :  { %v741_v50 = vadd.f32 %v1116_v32, %v740_v40 }
 0x641   :  { %v760_v52 = vadd.f32 %v1118_v33, %v759_v42 }
 0x642   :  { %v745_v53 = vsel %vm744_vm8, %v1116_v32, %v741_v50 }
 0x643   :  { %v750_v55 = vsel %vm747_vm9, %v749_v51, %v745_v53  ;;  %v764_v57 = vsel %vm763_vm2, %v1118_v33, %v760_v52 }
 0x644   :  { %v774_v58 = vmul.f32 %v773_v56, %v750_v55  ;;  %v769_v0 = vsel %vm766_vm10, %v768_v54, %v764_v57 }
 0x645   :  { %v772_v1 = vsel %vm200_vm5, %v769_v0, %v1120_v49 }
 0x646   :  { %775 = vrot.lane.b32.xlu2 %v774_v58, %s1202_s2 }
 0x6a0   :  { %v776_v2 = vpop.permute.xlu2 %775 }
 0x6a1   :  { %v777_v3 = vadd.f32 %v776_v2, %v774_v58 }
 0x6a3   :  { %1121 = vtanh.f32 %v777_v3 }
 0x6a9   :  { %v1122_v4 = vpop.eup %1121 }
 0x6aa   :  { %v779_v5 = vmul.f32 %v1122_v4, %v772_v1 }
 0x6ac   :  { %781 = vst [vmem:[#allocation6 + $0x30] sm:$0xff] %v779_v5  ;;  %1035 = vmatmul.msk.f32.vlgmr.msra.gmra.mxu0 %vm208_vm1, %v779_v5  ;;  %1036 = vmatmul.msk.f32.vlgmr.msra.gmra.mxu1 %vm208_vm1, %v779_v5 }
 0x729   :  { %v804_v6 = vpop.f32.mrf.mxu0  ;;  %v824_v7 = vpop.f32.mrf.mxu1 }
 0x72a   :  { %v827_v12 = vadd.f32 %v804_v6, %v1516_v44  ;;  %v828_v13 = vadd.f32 %v824_v7, %v1518_v45 }
 0x72c   :  { %v1037_v17 = vmul.f32 -1.442695, %v827_v12  ;;  %v1038_v18 = vmul.f32 -1.442695, %v828_v13 }
 0x72e   :  { %1123 = vpow2.f32 %v1037_v17 }
 0x72f   :  { %1125 = vpow2.f32 %v1038_v18 }
 0x734   :  { %v1124_v21 = vpop.eup %1123 }
 0x735   :  { %v1126_v22 = vpop.eup %1125  ;;  %v832_v25 = vadd.f32 1.0, %v1124_v21 }
 0x736   :  { %v851_v26 = vadd.f32 1.0, %v1126_v22 }
 0x737   :  { %1127 = vrcp.f32 %v832_v25  ;;  %v844_v44 = vand.u32 2147483648, %v832_v25  ;;  %v842_v10 = vand.u32 2147483647, %v832_v25  ;;  %vm838_vm13 = vweird.f32 %v832_v25 }
 0x738   :  { %1129 = vrcp.f32 %v851_v26  ;;  %v863_v9 = vand.u32 2147483648, %v851_v26  ;;  %v861_v14 = vand.u32 2147483647, %v851_v26  ;;  %vm857_vm14 = vweird.f32 %v851_v26 }
 0x739   :  { %1131 = vtanh.f32 %v828_v13  ;;  %v845_v19 = vor.u32 1.1754944e-38, %v844_v44  ;;  %vm843_vm0 = vcmp.eq.f32.partialorder %v842_v10, 8.507059e+37 }
 0x73a   :  { %v864_v24 = vor.u32 1.1754944e-38, %v863_v9  ;;  %vm862_vm4 = vcmp.eq.f32.partialorder %v861_v14, 8.507059e+37 }
 0x73d   :  { %v1128_v59 = vpop.eup %1127 }
 0x73e   :  { %v1130_v60 = vpop.eup %1129  ;;  %v834_v61 = vmul.f32 %v1128_v59, %v832_v25  ;;  %vm839_vm11 = vweird.f32 %v1128_v59 }
 0x73f   :  { %v853_v62 = vmul.f32 %v1130_v60, %v851_v26  ;;  %vm858_vm12 = vweird.f32 %v1130_v60  ;;  %v1132_v15 = vpop.eup %1131  ;;  %vm840_vm15 = vmor %vm838_vm13, %vm839_vm11 }
 0x740   :  { %v835_v63 = vsub.f32 1.0, %v834_v61  ;;  %vm859_vm3 = vmor %vm857_vm14, %vm858_vm12  ;;  %v869_v28 = vsel %vm200_vm5, %v777_v3, %v1132_v15 }
 0x741   :  { %v854_v8 = vsub.f32 1.0, %v853_v62 }
 0x742   :  { %v836_v45 = vmul.f32 %v1128_v59, %v835_v63 }
 0x743   :  { %v855_v11 = vmul.f32 %v1130_v60, %v854_v8 }
 0x744   :  { %v837_v16 = vadd.f32 %v1128_v59, %v836_v45 }
 0x745   :  { %v856_v20 = vadd.f32 %v1130_v60, %v855_v11 }
 0x746   :  { %v841_v23 = vsel %vm840_vm15, %v1128_v59, %v837_v16 }
 0x747   :  { %v846_v27 = vsel %vm843_vm0, %v845_v19, %v841_v23  ;;  %v860_v29 = vsel %vm859_vm3, %v1130_v60, %v856_v20 }
 0x748   :  { %v870_v30 = vmul.f32 %v869_v28, %v846_v27  ;;  %v865_v31 = vsel %vm862_vm4, %v864_v24, %v860_v29 }
 0x749   :  { %v868_v32 = vsel %vm200_vm5, %v865_v31, %v1132_v15 }
 0x74a   :  { %871 = vrot.lane.b32.xlu0 %v870_v30, %s1202_s2 }
 0x7bc   :  { %v872_v33 = vpop.permute.xlu0 %871 }
 0x7bd   :  { %v873_v34 = vadd.f32 %v872_v33, %v870_v30 }
 0x7bf   :  { %1133 = vtanh.f32 %v873_v34 }
 0x7c5   :  { %v1134_v35 = vpop.eup %1133 }
 0x7c6   :  { %v875_v36 = vmul.f32 %v1134_v35, %v868_v32 }
 0x7c8   :  { %877 = vst [vmem:[#allocation6 + $0x38] sm:$0xff] %v875_v36  ;;  %1039 = vmatmul.msk.f32.vlgmr.msrb.gmra.mxu2 %vm208_vm1, %v875_v36  ;;  %1040 = vmatmul.msk.f32.vlgmr.msrb.gmra.mxu3 %vm208_vm1, %v875_v36 }
 0x84b   :  { %v900_v37 = vpop.f32.mrf.mxu2  ;;  %v920_v38 = vpop.f32.mrf.mxu3 }
 0x84c   :  { %v923_v39 = vadd.f32 %v900_v37, %v1520_v46  ;;  %v924_v40 = vadd.f32 %v920_v38, %v1522_v47 }
 0x84e   :  { %v1041_v41 = vmul.f32 -1.442695, %v923_v39  ;;  %v1042_v42 = vmul.f32 -1.442695, %v924_v40 }
 0x850   :  { %1135 = vpow2.f32 %v1041_v41 }
 0x851   :  { %1137 = vpow2.f32 %v1042_v42 }
 0x856   :  { %v1136_v48 = vpop.eup %1135 }
 0x857   :  { %v1138_v49 = vpop.eup %1137  ;;  %v928_v50 = vadd.f32 1.0, %v1136_v48 }
 0x858   :  { %v947_v51 = vadd.f32 1.0, %v1138_v49 }
 0x859   :  { %1139 = vrcp.f32 %v928_v50  ;;  %v940_v46 = vand.u32 2147483648, %v928_v50  ;;  %v938_v47 = vand.u32 2147483647, %v928_v50  ;;  %vm934_vm7 = vweird.f32 %v928_v50 }
 0x85a   :  { %1141 = vrcp.f32 %v947_v51  ;;  %v959_v0 = vand.u32 2147483648, %v947_v51  ;;  %v957_v2 = vand.u32 2147483647, %v947_v51  ;;  %vm953_vm9 = vweird.f32 %v947_v51 }
 0x85b   :  { %1143 = vtanh.f32 %v924_v40  ;;  %v941_v5 = vor.u32 1.1754944e-38, %v940_v46  ;;  %vm939_vm2 = vcmp.eq.f32.partialorder %v938_v47, 8.507059e+37 }
 0x85c   :  { %v960_v12 = vor.u32 1.1754944e-38, %v959_v0  ;;  %vm958_vm11 = vcmp.eq.f32.partialorder %v957_v2, 8.507059e+37 }
 0x85f   :  { %v1140_v52 = vpop.eup %1139 }
 0x860   :  { %v1142_v53 = vpop.eup %1141  ;;  %v930_v54 = vmul.f32 %v1140_v52, %v928_v50  ;;  %vm935_vm1 = vweird.f32 %v1140_v52 }
 0x861   :  { %v949_v55 = vmul.f32 %v1142_v53, %v947_v51  ;;  %vm954_vm6 = vweird.f32 %v1142_v53  ;;  %v1144_v3 = vpop.eup %1143  ;;  %vm936_vm8 = vmor %vm934_vm7, %vm935_vm1 }
 0x862   :  { %v931_v56 = vsub.f32 1.0, %v930_v54  ;;  %vm955_vm10 = vmor %vm953_vm9, %vm954_vm6  ;;  %v965_v17 = vsel %vm200_vm5, %v873_v34, %v1144_v3 }
 0x863   :  { %v950_v57 = vsub.f32 1.0, %v949_v55 }
 0x864   :  { %v932_v58 = vmul.f32 %v1140_v52, %v931_v56 }
 0x865   :  { %v951_v1 = vmul.f32 %v1142_v53, %v950_v57 }
 0x866   :  { %v933_v4 = vadd.f32 %v1140_v52, %v932_v58 }
 0x867   :  { %v952_v6 = vadd.f32 %v1142_v53, %v951_v1 }
 0x868   :  { %v937_v7 = vsel %vm936_vm8, %v1140_v52, %v933_v4 }
 0x869   :  { %v942_v13 = vsel %vm939_vm2, %v941_v5, %v937_v7  ;;  %v956_v18 = vsel %vm955_vm10, %v1142_v53, %v952_v6 }
 0x86a   :  { %v966_v21 = vmul.f32 %v965_v17, %v942_v13  ;;  %v961_v22 = vsel %vm958_vm11, %v960_v12, %v956_v18 }
 0x86b   :  { %v964_v25 = vsel %vm200_vm5, %v961_v22, %v1144_v3 }
 0x86c   :  { %967 = vrot.lane.b32.xlu1 %v966_v21, %s1202_s2 }
 0x8de   :  { %v968_v26 = vpop.permute.xlu1 %967 }
 0x8df   :  { %v969_v59 = vadd.f32 %v968_v26, %v966_v21 }
 0x8e1   :  { %1145 = vtanh.f32 %v969_v59 }
 0x8e7   :  { %v1146_v60 = vpop.eup %1145 }
 0x8e8   :  { %v971_v61 = vmul.f32 %v1146_v60, %v964_v25 }
 0x8ea   :  { %973 = vst [vmem:[#allocation6 + $0x40] sm:$0xff] %v971_v61 }
 0x8eb   :  { %986 = dma.vmem_to_hbm [thread:$0]  %s979_s5, 1152, %s981_s8, [#allocation5], %s1204_s1, %s1204_s1, %s1205_s9  }
 0x8ec   :  { %1197 = dma.done.wait [#allocation5], 1152  }
 0x8ed   :  { %1198 = vsyncadd [#allocation5], 4294966144 }
 0x8ee   :  { %991 = vsyncpa [#allocation4], 1 }
 0x8ef   :  { %992 = vsyncpa [#allocation5], 1 }

</bundles_post_ra>
